<compile_context>
chip_gen: v7x
topology: tpu7x:2x2x1
jax: 0.10.0
libtpu: 0.0.40
codegen_flags: <defaults>
</compile_context>

<pallas_src>
import functools
import numpy as np
import jax
import jax.numpy as jnp
from jax.experimental import pallas as pl
from jax.experimental.pallas import tpu as pltpu


def _prepare_filter(f=[1, 2, 1], normalize=True, flip=False):
    """Reproduces _blur2d.__init__ filter construction; returns separable 1-D
    taps (when the input filter is 1-D), the 2-D filter, spatial pad, scale."""
    f_arr = np.array(f, dtype=np.float32)
    pad = (len(f_arr) - 1) // 2
    if f_arr.ndim == 1:
        f1d = f_arr.copy()
        f2d = f1d[:, None] * f1d[None, :]
    else:
        f1d = None
        f2d = f_arr.copy()
    assert f2d.ndim == 2
    scale = (1.0 / float(np.sum(f2d))) if normalize else 1.0
    if flip:
        f2d = f2d[::-1, ::-1].copy()
        if f1d is not None:
            f1d = f1d[::-1].copy()
    f1d_t = None if f1d is None else tuple(float(w) for w in f1d)
    f2d_t = tuple(tuple(float(w) for w in row) for row in f2d)
    return f1d_t, f2d_t, pad, float(scale)


def _blur_kernel(x_ref, o_ref, *, f1d, f2d, pad, H, W, scale, pow2_w):
    # x_ref / o_ref: (Bb, H*W).  Each sublane row is one whole image flattened
    # row-major along the lane axis.  Every tap = lane roll (XLU) + iota mask
    # (VPU select); no padded scratch, no memsets, no misaligned loads/stores.
    HW = H * W
    # TODO(synk): keep the math in bf16 on v6e/v7x when the input is bf16
    # (halves bytes / doubles VPU width); f32 widening kept here since it is
    # required on v5e and the demo input is f32 anyway.
    x = x_ref[...].astype(jnp.float32)

    j = jax.lax.broadcasted_iota(jnp.int32, x.shape, 1)      # flat pixel index
    w_pos = (j & (W - 1)) if pow2_w else (j % W)             # column index

    def shifted(arr, di, dj):
        """arr value at (h+di, w+dj) seen from flat position j=h*W+w; zero
        outside the image (== conv2d zero padding)."""
        off = di * W + dj
        t = arr if off == 0 else pltpu.roll(arr, (-off) % HW, axis=1)
        if dj > 0:
            t = jnp.where(w_pos < W - dj, t, 0.0)
        elif dj < 0:
            t = jnp.where(w_pos >= -dj, t, 0.0)
        if di > 0:
            t = jnp.where(j < (H - di) * W, t, 0.0)
        elif di < 0:
            t = jnp.where(j >= (-di) * W, t, 0.0)
        return t

    def wterm(t, wgt):
        if wgt == 1.0:
            return t
        if wgt == 2.0:
            return t + t          # add-only for the default [1,2,1] taps
        return t * wgt

    if f1d is not None:
        # Separable: horizontal pass (column taps), then vertical pass (row
        # taps) on the vreg-resident intermediate (never stored to VMEM).
        acc_h = None
        for k, wgt in enumerate(f1d):
            if wgt == 0.0:
                continue
            term = wterm(shifted(x, 0, k - pad), wgt)
            acc_h = term if acc_h is None else acc_h + term
        out = None
        for k, wgt in enumerate(f1d):
            if wgt == 0.0:
                continue
            term = wterm(shifted(acc_h, k - pad, 0), wgt)
            out = term if out is None else out + term
    else:
        # General (non-separable) user-provided 2-D filter fallback.
        out = None
        for ki, row in enumerate(f2d):
            for kj, wgt in enumerate(row):
                if wgt == 0.0:
                    continue
                term = wterm(shifted(x, ki - pad, kj - pad), wgt)
                out = term if out is None else out + term

    if scale != 1.0:
        out = out * scale
    o_ref[...] = out.astype(o_ref.dtype)


def _vmem_limit_bytes():
    """Scoped-VMEM ceiling: ~half the chip's VMEM (v7x: 64 MiB/TC -> 32 MiB),
    capped at 64 MiB; 32 MiB fallback is safe on v5e/v6e/v7x."""
    try:
        cap = int(pltpu.get_tpu_info().vmem_capacity_bytes)
        return int(min(max(cap // 2, 32 * 1024 * 1024), 64 * 1024 * 1024))
    except Exception:
        return 32 * 1024 * 1024


def _pick_batch_block(B, HW, itemsize, budget_bytes, min_steps=4):
    """Images (rows of the flattened (B, H*W) array) per grid step.

    Layout-aware: a (Bb, HW) block really occupies (round8(Bb), round128(HW))
    in VMEM.  Bb stays a sublane-granule multiple (8) unless B itself is
    smaller, is capped by a VMEM budget covering the double-buffered in/out
    blocks plus ~6 f32 temporaries, and is further capped so the grid keeps
    >= min_steps steps (pipelining + dual-TC sharding on v7x) with an even
    step count where possible."""
    if B <= 8:
        return B
    lanes = pl.cdiv(HW, 128) * 128
    per_row = lanes * (4 * itemsize + 24)     # dbl-buffered in+out + f32 temps
    bb_cap = max(8, int(budget_bytes // per_row))
    steps = max(int(pl.cdiv(B, bb_cap)), min_steps)
    if steps % 2:
        steps += 1                            # balanced work for v7x's 2 TCs
    bb = max(8, (int(pl.cdiv(B, steps)) // 8) * 8)
    # Best-effort nudge (sublane-granule units) towards an even grid length.
    while bb > 8 and int(pl.cdiv(B, bb)) % 2 == 1:
        bb -= 8
    return min(bb, B)


def blur2d_forward(x, f=[1, 2, 1], normalize=True, flip=False, stride=1,
                   vmem_block_budget_bytes=12 * 1024 * 1024):
    """Forward of blur2d == F.conv2d(x, tile(f2d, C), groups=C, padding=p)."""
    assert x.ndim == 4
    assert isinstance(stride, int) and stride >= 1
    # TODO(synk): only stride=1 (the module default) is implemented in-kernel.
    assert stride == 1, "stride > 1 not implemented"

    f1d, f2d, pad, scale = _prepare_filter(f, normalize, flip)
    assert len(f2d) % 2 == 1 and len(f2d[0]) % 2 == 1, "odd filter sizes only"

    N, C, H, W = x.shape
    B, HW = N * C, H * W

    # Depthwise blur -> every (n, c) image is independent.  Flatten each image
    # to one lane-major row: (N, C, H, W) -> (B, H*W) is metadata-only and
    # gives fully lane-dense loads/stores even for W << 128.
    # TODO(synk): for a single image too large for the VMEM budget, tile H with
    #             a 2*pad-row halo; for tiny images (H*W << 128) pack several
    #             images per sublane row along lanes.
    x2 = x.reshape(B, HW)

    Bb = _pick_batch_block(B, HW, x.dtype.itemsize, vmem_block_budget_bytes)
    grid = (pl.cdiv(B, Bb),)   # ragged trailing block (if any) is masked by Pallas

    kernel = functools.partial(
        _blur_kernel, f1d=f1d, f2d=f2d, pad=pad, H=H, W=W, scale=scale,
        pow2_w=(W & (W - 1)) == 0)

    out2 = pl.pallas_call(
        kernel,
        out_shape=jax.ShapeDtypeStruct((B, HW), x.dtype),
        grid_spec=pltpu.PrefetchScalarGridSpec(
            num_scalar_prefetch=0,
            grid=grid,
            in_specs=[pl.BlockSpec((Bb, HW), lambda b: (b, 0))],
            out_specs=pl.BlockSpec((Bb, HW), lambda b: (b, 0)),
        ),
        compiler_params=pltpu.CompilerParams(
            dimension_semantics=("parallel",),   # shards B across TCs on v7x
            vmem_limit_bytes=_vmem_limit_bytes(),
        ),
    )(x2)
    return out2.reshape(N, C, H, W)


def _reference(x, f=[1, 2, 1], normalize=True, flip=False, stride=1):
    """Pure-JAX reference matching F.conv2d(x, tile(f, C), groups=C, padding=p)."""
    f_arr = np.array(f, dtype=np.float32)
    pad = (len(f_arr) - 1) // 2
    if f_arr.ndim == 1:
        f_arr = f_arr[:, None] * f_arr[None, :]
    if normalize:
        f_arr = f_arr / np.sum(f_arr)
    if flip:
        f_arr = f_arr[::-1, ::-1].copy()
    C = x.shape[1]
    w = jnp.tile(jnp.asarray(f_arr)[None, None, :, :], (C, 1, 1, 1))  # (C,1,kh,kw)
    return jax.lax.conv_general_dilated(
        x, w,
        window_strides=(stride, stride),
        padding=((pad, pad), (pad, pad)),
        feature_group_count=C,
        dimension_numbers=("NCHW", "OIHW", "NCHW"),
    )


if __name__ == "__main__":
    key = jax.random.PRNGKey(0)
    N, C, H, W = 2, 4, 16, 16
    x = jax.random.normal(key, (N, C, H, W), dtype=jnp.float32)

    out = jax.block_until_ready(blur2d_forward(x))
    ref = jax.block_until_ready(_reference(x))
    assert out.shape == (N, C, H, W)
    assert np.allclose(np.asarray(out), np.asarray(ref), atol=1e-5, rtol=1e-5)

    # Second config: multi-step grid, ragged trailing block, non-square spatial.
    x2 = jax.random.normal(jax.random.PRNGKey(1), (3, 5, 24, 32), dtype=jnp.float32)
    out2 = jax.block_until_ready(blur2d_forward(x2))
    ref2 = jax.block_until_ready(_reference(x2))
    assert np.allclose(np.asarray(out2), np.asarray(ref2), atol=1e-5, rtol=1e-5)

    print("KERNEL_OK")
</pallas_src>

<mosaic_0001>
module attributes {stable_mosaic.version = 11 : i64} {
  func.func @_blur_kernel(%arg0: i32, %arg1: memref<8x256xf32, #tpu.memory_space<vmem>>, %arg2: memref<8x256xf32, #tpu.memory_space<vmem>>) attributes {dimension_semantics = [#tpu.dimension_semantics<parallel>], iteration_bounds = array<i64: 1>, scalar_prefetch = 0 : i64, scratch_operands = 0 : i64, tpu.core_type = #tpu.core_type<tc>, window_params = [{transform_indices = @transform_0, window_bounds = array<i64: 8, 256>}, {transform_indices = @transform_1, window_bounds = array<i64: 8, 256>}]} {
    %c0 = arith.constant 0 : index
    %c0_0 = arith.constant 0 : index
    %0 = vector.load %arg1[%c0, %c0_0] : memref<8x256xf32, #tpu.memory_space<vmem>>, vector<8x256xf32>
    %1 = tpu.iota {dimensions = array<i32: 1>} : vector<8x256xi32>
    %c15_i32 = arith.constant 15 : i32
    %2 = vector.broadcast %c15_i32 : i32 to vector<8x256xi32>
    %3 = arith.andi %1, %2 : vector<8x256xi32>
    %c1_i32 = arith.constant 1 : i32
    %4 = tpu.dynamic_rotate %0 by %c1_i32 dim 1 : vector<8x256xf32>, i32 -> vector<8x256xf32>
    %c1_i32_1 = arith.constant 1 : i32
    %5 = vector.broadcast %c1_i32_1 : i32 to vector<8x256xi32>
    %6 = arith.cmpi sge, %3, %5 : vector<8x256xi32>
    %cst = arith.constant 0.000000e+00 : f32
    %7 = vector.broadcast %cst : f32 to vector<8x256xf32>
    %8 = arith.select %6, %4, %7 : vector<8x256xi1>, vector<8x256xf32>
    %9 = arith.addf %0, %0 : vector<8x256xf32>
    %10 = arith.addf %8, %9 : vector<8x256xf32>
    %c255_i32 = arith.constant 255 : i32
    %11 = tpu.dynamic_rotate %0 by %c255_i32 dim 1 : vector<8x256xf32>, i32 -> vector<8x256xf32>
    %c15_i32_2 = arith.constant 15 : i32
    %12 = vector.broadcast %c15_i32_2 : i32 to vector<8x256xi32>
    %13 = arith.cmpi slt, %3, %12 : vector<8x256xi32>
    %cst_3 = arith.constant 0.000000e+00 : f32
    %14 = vector.broadcast %cst_3 : f32 to vector<8x256xf32>
    %15 = arith.select %13, %11, %14 : vector<8x256xi1>, vector<8x256xf32>
    %16 = arith.addf %10, %15 : vector<8x256xf32>
    %c16_i32 = arith.constant 16 : i32
    %17 = tpu.dynamic_rotate %16 by %c16_i32 dim 1 : vector<8x256xf32>, i32 -> vector<8x256xf32>
    %c16_i32_4 = arith.constant 16 : i32
    %18 = vector.broadcast %c16_i32_4 : i32 to vector<8x256xi32>
    %19 = arith.cmpi sge, %1, %18 : vector<8x256xi32>
    %cst_5 = arith.constant 0.000000e+00 : f32
    %20 = vector.broadcast %cst_5 : f32 to vector<8x256xf32>
    %21 = arith.select %19, %17, %20 : vector<8x256xi1>, vector<8x256xf32>
    %22 = arith.addf %16, %16 : vector<8x256xf32>
    %23 = arith.addf %21, %22 : vector<8x256xf32>
    %c240_i32 = arith.constant 240 : i32
    %24 = tpu.dynamic_rotate %16 by %c240_i32 dim 1 : vector<8x256xf32>, i32 -> vector<8x256xf32>
    %c240_i32_6 = arith.constant 240 : i32
    %25 = vector.broadcast %c240_i32_6 : i32 to vector<8x256xi32>
    %26 = arith.cmpi slt, %1, %25 : vector<8x256xi32>
    %cst_7 = arith.constant 0.000000e+00 : f32
    %27 = vector.broadcast %cst_7 : f32 to vector<8x256xf32>
    %28 = arith.select %26, %24, %27 : vector<8x256xi1>, vector<8x256xf32>
    %29 = arith.addf %23, %28 : vector<8x256xf32>
    %cst_8 = arith.constant 6.250000e-02 : f32
    %30 = vector.broadcast %cst_8 : f32 to vector<8x256xf32>
    %31 = arith.mulf %29, %30 : vector<8x256xf32>
    %c0_9 = arith.constant 0 : index
    %c0_10 = arith.constant 0 : index
    %32 = vector.load %arg2[%c0_9, %c0_10] : memref<8x256xf32, #tpu.memory_space<vmem>>, vector<8x256xf32>
    tpu.vector_store %arg2[%c0_9, %c0_10], %31 {strides = array<i32>} : memref<8x256xf32, #tpu.memory_space<vmem>>, vector<8x256xf32>,
    return
  }
  func.func @transform_0(%arg0: i32) -> (i32, i32) {
    %c0_i32 = arith.constant 0 : i32
    %c0_i32_0 = arith.constant 0 : i32
    return %arg0, %c0_i32 : i32, i32
  }
  func.func @transform_1(%arg0: i32) -> (i32, i32) {
    %c0_i32 = arith.constant 0 : i32
    %c0_i32_0 = arith.constant 0 : i32
    return %arg0, %c0_i32 : i32, i32
  }
}

</mosaic_0001>

<bundles_post_ra>
// kernel: tpu_custom_call.1
= control target key start
LH: loop header
LB: loop body
LE: loop exit
PB: predicated region body
PF: predicated region fallthrough
CT: control target
= control target key end

     0   :  { %6 = vsyncpa [#allocation3], 0  ;;  %s197_s0 = inlined_call_operand.hbm [shape: f32[8,256], index: 0, kind: input, shape index: {}]   ;;  %s198_s1 = inlined_call_operand.hbm [shape: f32[8,256], index: 1, kind: output, shape index: {}]  }
   0x1   :  { %7 = vsyncpa [#allocation4], 0  ;;  %s157_s6 = smov [#allocation2]   ;;  %s109_s10 = scalar_lea.hbm %s197_s0, 256 }
   0x2   :  { %s14_s7 = sshll.u32 %s157_s6, 4  ;;  %p110_p0 = scmp.ne.s32.totalorder %s197_s0, %s109_s10  ;;  %s15_s7 = int_to_ptr.vmem [resolvable:$true] %s14_s7 }
   0x3   :  { %p113_p1 = scmp.lt.u32.totalorder %s109_s10, %s197_s0 }
   0x5   :  { %p115_p2 = pnand %p113_p1, %p110_p0 }
   0x7   :  { %118 = shalt.err (!%p115_p2)
}
   0x8   :  { %s119_s15 = scalar_lea.vmem %s15_s7, 256  ;;  %p124_p4 = scmp.lt.s32.totalorder %s15_s7, %s15_s7 }
   0x9   :  { %p120_p3 = scmp.ne.s32.totalorder %s15_s7, %s119_s15  ;;  %p125_p5 = scmp.lt.s32.totalorder %s119_s15, %s119_s15 }
   0xb   :  { %p126_p6 = por %p125_p5, %p124_p4 }
   0xd   :  { %p127_p7 = pnand %p126_p6, %p120_p3 }
   0xf   :  { %130 = shalt.err (!%p127_p7)
}
  0x10   :  { %17 = dma.hbm_to_vmem [thread:$0]  %s197_s0, 256, %s15_s7, [#allocation3]  }
  0x11   :  { %153 = dma.done.wait [#allocation3], 256  }
  0x12   :  { %154 = vsyncadd [#allocation3], 4294967040  ;;  %v21_v0 = vld [vmem:[#allocation2] sm:$0xff]  ;;  %s158_s18 = smov 127   ;;  %s159_s19 = smov 1   ;;  %v22_v1 = vld [vmem:[#allocation2 + $0x8] sm:$0xff]  ;;  %v23_v2 = vlaneseq }
  0x13   :  { %43 = vrot.lane.b32.xlu1 %v21_v0, %s158_s18  ;;  %28 = vrot.lane.b32.xlu0 %v21_v0, %s159_s19  ;;  %v39_v9 = vadd.f32 %v21_v0, %v21_v0  ;;  %v40_v10 = vadd.f32 %v22_v1, %v22_v1  ;;  %s160_s0 = smov 16   ;;  %s161_s20 = smov 112  }
  0x14   :  { %v24_v3 = vand.u32 127, %v23_v2  ;;  %s162_s21 = smov [#allocation5]  }
  0x15   :  { %s94_s22 = sshll.u32 %s162_s21, 4  ;;  %s95_s22 = int_to_ptr.vmem [resolvable:$true] %s94_s22 }
  0x16   :  { %v25_v4 = vadd.s32 128, %v24_v3  ;;  %v26_v5 = vand.u32 15, %v24_v3  ;;  %vm47_vm0 = vcmp.lt.s32.totalorder %v24_v3, 127  ;;  %vm32_vm1 = vcmp.lt.s32.totalorder %v24_v3, 1  ;;  %s131_s23 = scalar_lea.vmem %s95_s22, 256  ;;  %p136_p9 = scmp.lt.s32.totalorder %s95_s22, %s95_s22 }
  0x17   :  { %45 = vrot.lane.b32.xlu1 %v22_v1, %s158_s18  ;;  %30 = vrot.lane.b32.xlu0 %v22_v1, %s159_s19  ;;  %vm60_vm6 = vcmp.lt.s32.totalorder %v24_v3, 16  ;;  %vm63_vm7 = vcmp.ge.s32.totalorder %v24_v3, 16  ;;  %vm75_vm8 = vcmp.lt.s32.totalorder %v24_v3, 112  ;;  %p132_p8 = scmp.ne.s32.totalorder %s95_s22, %s131_s23  ;;  %p137_p10 = scmp.lt.s32.totalorder %s131_s23, %s131_s23 }
  0x18   :  { %v27_v6 = vand.u32 15, %v25_v4  ;;  %vm35_vm2 = vcmp.ge.s32.totalorder %v26_v5, 1  ;;  %vm50_vm4 = vcmp.lt.s32.totalorder %v26_v5, 15  ;;  %vm79_vm9 = vcmp.lt.s32.totalorder %v25_v4, 240 }
  0x19   :  { %p138_p11 = por %p137_p10, %p136_p9 }
  0x1a   :  { %vm36_vm3 = vcmp.ge.s32.totalorder %v27_v6, 1  ;;  %vm51_vm5 = vcmp.lt.s32.totalorder %v27_v6, 15 }
  0x1b   :  { %p139_p12 = pnand %p138_p11, %p132_p8 }
  0x85   :  { %v44_v7 = vpop.permute.xlu1 %43  ;;  %v29_v8 = vpop.permute.xlu0 %28 }
  0x89   :  { %v46_v11 = vpop.permute.xlu1 %45  ;;  %v31_v12 = vpop.permute.xlu0 %30 }
  0x8a   :  { %v48_v13 = vsel %vm47_vm0, %v44_v7, %v46_v11  ;;  %v49_v14 = vsel %vm47_vm0, %v46_v11, %v44_v7  ;;  %v33_v15 = vsel %vm32_vm1, %v29_v8, %v31_v12  ;;  %v34_v16 = vsel %vm32_vm1, %v31_v12, %v29_v8 }
  0x8b   :  { %v37_v17 = vsel %vm35_vm2, %v34_v16, 0.0  ;;  %v38_v18 = vsel %vm36_vm3, %v33_v15, 0.0  ;;  %v52_v21 = vsel %vm50_vm4, %v48_v13, 0.0  ;;  %v53_v22 = vsel %vm51_vm5, %v49_v14, 0.0 }
  0x8c   :  { %v41_v19 = vadd.f32 %v39_v9, %v37_v17  ;;  %v42_v20 = vadd.f32 %v40_v10, %v38_v18 }
  0x8e   :  { %v55_v23 = vadd.f32 %v53_v22, %v42_v20  ;;  %v54_v24 = vadd.f32 %v52_v21, %v41_v19 }
  0x90   :  { %58 = vrot.lane.b32.xlu1 %v55_v23, %s160_s0  ;;  %56 = vrot.lane.b32.xlu0 %v54_v24, %s160_s0  ;;  %v67_v28 = vadd.f32 %v54_v24, %v54_v24  ;;  %v68_v31 = vadd.f32 %v55_v23, %v55_v23 }
  0x94   :  { %73 = vrot.lane.b32.xlu1 %v55_v23, %s161_s20  ;;  %71 = vrot.lane.b32.xlu0 %v54_v24, %s161_s20 }
 0x102   :  { %v59_v25 = vpop.permute.xlu1 %58  ;;  %v57_v26 = vpop.permute.xlu0 %56 }
 0x103   :  { %v62_v27 = vsel %vm60_vm6, %v59_v25, %v57_v26  ;;  %v61_v29 = vsel %vm60_vm6, %v57_v26, %v59_v25 }
 0x104   :  { %v65_v30 = vsel %vm63_vm7, %v62_v27, 0.0  ;;  %v70_v35 = vadd.f32 %v68_v31, %v61_v29 }
 0x105   :  { %v69_v32 = vadd.f32 %v67_v28, %v65_v30 }
 0x106   :  { %v74_v33 = vpop.permute.xlu1 %73  ;;  %v72_v34 = vpop.permute.xlu0 %71 }
 0x107   :  { %v76_v36 = vsel %vm75_vm8, %v72_v34, %v74_v33  ;;  %v77_v37 = vsel %vm75_vm8, %v74_v33, %v72_v34 }
 0x108   :  { %v81_v38 = vsel %vm79_vm9, %v77_v37, 0.0  ;;  %v82_v39 = vadd.f32 %v76_v36, %v69_v32 }
 0x109   :  { %v83_v40 = vadd.f32 %v81_v38, %v70_v35 }
 0x10a   :  { %v84_v41 = vmul.f32 0.0625, %v82_v39 }
 0x10b   :  { %v85_v42 = vmul.f32 0.0625, %v83_v40 }
 0x10c   :  { %86 = vst [vmem:[#allocation5] sm:$0xff] %v84_v41 }
 0x10d   :  { %87 = vst [vmem:[#allocation5 + $0x8] sm:$0xff] %v85_v42 }
 0x10e   :  { %142 = shalt.err (!%p139_p12)
}
 0x10f   :  { %s143_s26 = scalar_lea.hbm %s198_s1, 256 }
 0x110   :  { %p144_p13 = scmp.ne.s32.totalorder %s198_s1, %s143_s26  ;;  %p147_p0 = scmp.lt.u32.totalorder %s143_s26, %s198_s1 }
 0x112   :  { %p149_p1 = pnand %p147_p0, %p144_p13 }
 0x114   :  { %152 = shalt.err (!%p149_p1)
}
 0x115   :  { %97 = dma.vmem_to_hbm [thread:$0]  %s95_s22, 256, %s198_s1, [#allocation4]  }
 0x116   :  { %155 = dma.done.wait [#allocation4], 256  }
 0x117   :  { %156 = vsyncadd [#allocation4], 4294967040 }
 0x118   :  { %101 = vsyncpa [#allocation3], 1 }
 0x119   :  { %102 = vsyncpa [#allocation4], 1 }

</bundles_post_ra>
